<compile_context>
chip_gen: v6e
topology: v6e:2x2x1
jax: 0.10.0
libtpu: 0.0.40
codegen_flags: <defaults>
</compile_context>

<pallas_src>
import functools

import jax
import jax.numpy as jnp
from jax.experimental import pallas as pl
from jax.experimental.pallas import tpu as pltpu

_PAIRWISE_EPS = 1e-6    # torch F.pairwise_distance default eps (added to diff)
_NORMALIZE_EPS = 1e-12  # torch F.normalize default eps (clamp on the norm)
_MAX_BLOCK_B = 2048     # rows/tile: already past the ~85% HBM-roofline plateau


def _round_up(x: int, m: int) -> int:
    return ((x + m - 1) // m) * m


def _round_down(x: int, m: int) -> int:
    return max(m, (x // m) * m)


def _vmem_budgets():
    """(input-tile byte budget, vmem_limit_bytes), generation-aware."""
    try:
        cap = pltpu.get_tpu_info().vmem_capacity_bytes
    except Exception:
        cap = 64 * 1024 * 1024  # assume the smallest tier (v7x) if query fails
    if cap >= 128 * 1024 * 1024:
        # v5e / v6e: 128 MiB physical -> big tiles amortize per-step overhead.
        return 48 * 1024 * 1024, 64 * 1024 * 1024
    # v7x: 64 MiB physical / 32 MiB scoped -> leave headroom for Mosaic
    # block-sized temporaries on top of the double-buffered input tiles.
    return 12 * 1024 * 1024, 32 * 1024 * 1024


def _pick_block_b(batch, dim, n_streams, itemsize, block_b, budget_bytes, align):
    """Batch-tile size: aligned, double-buffered streams fit the VMEM budget."""
    if block_b is None:
        block_b = budget_bytes // (dim * itemsize * n_streams * 2)
        block_b = min(_MAX_BLOCK_B, _round_down(block_b, align))
    block_b = max(align, _round_up(int(block_b), align))
    # No point tiling beyond the (aligned) batch.
    return min(block_b, _round_up(batch, align))


def _check_inputs(x):
    assert x.ndim == 2, "expected (batch, embedding_dim) inputs"
    assert x.dtype in (jnp.float32, jnp.bfloat16), "expected f32 or bf16 inputs"
    assert x.shape[1] % 128 == 0, "embedding dim must be a multiple of 128"


# ---------------------------------------------------------------------------
# FaceNetModel.forward final stage: F.normalize(embeddings, p=2, dim=1)
# ---------------------------------------------------------------------------
def _l2_normalize_kernel(x_ref, o_ref):
    x = x_ref[...].astype(jnp.float32)                       # (TB, D), math in f32
    sq = jnp.sum(x * x, axis=-1, keepdims=True)              # (TB, 1)
    # Exact per-row reciprocal (EUP) + broadcast multiply instead of a
    # (TB, D)-wide divide: keeps the kernel HBM-bound on v6e/v7x.
    inv = pl.reciprocal(jnp.maximum(jnp.sqrt(sq), _NORMALIZE_EPS), approx=False)
    o_ref[...] = (x * inv).astype(o_ref.dtype)               # lane-dense store


def l2_normalize(x, block_b=None):
    _check_inputs(x)
    b, d = x.shape
    budget, vmem_limit = _vmem_budgets()
    itemsize = jnp.dtype(x.dtype).itemsize
    align = 16 if itemsize == 2 else 8                        # bf16 packs 16 sublanes
    tb = _pick_block_b(b, d, n_streams=2, itemsize=itemsize,
                       block_b=block_b, budget_bytes=budget, align=align)
    spec = pl.BlockSpec((tb, d), lambda i: (i, 0))
    return pl.pallas_call(
        _l2_normalize_kernel,
        out_shape=jax.ShapeDtypeStruct((b, d), x.dtype),
        grid=(pl.cdiv(b, tb),),
        in_specs=[spec],
        out_specs=spec,
        compiler_params=pltpu.CompilerParams(
            dimension_semantics=("parallel",),                # independent rows
            vmem_limit_bytes=vmem_limit,
        ),
    )(x)


def facenet_forward(embeddings, block_b=None):
    """FaceNetModel.forward on already-extracted backbone+head embeddings."""
    return l2_normalize(embeddings, block_b=block_b)


# ---------------------------------------------------------------------------
# Triplet loss (FaceNet objective):
#   relu(pairwise_distance(a, p) - pairwise_distance(a, n) + margin).mean()
# Per-tile partial sums (no serialized accumulator) -> batch axis is parallel.
# ---------------------------------------------------------------------------
def _normalize_rows_f32(x):
    sq = jnp.sum(x * x, axis=-1, keepdims=True)
    inv = pl.reciprocal(jnp.maximum(jnp.sqrt(sq), _NORMALIZE_EPS), approx=False)
    return x * inv


def _triplet_partial_kernel(a_ref, p_ref, n_ref, o_ref, *,
                            margin, batch, block_b, normalize_inputs):
    i = pl.program_id(0)

    a = a_ref[...].astype(jnp.float32)   # math in f32 even for bf16 I/O
    p = p_ref[...].astype(jnp.float32)
    n = n_ref[...].astype(jnp.float32)

    if normalize_inputs:                 # fused F.normalize(..., p=2, dim=1)
        a = _normalize_rows_f32(a)
        p = _normalize_rows_f32(p)
        n = _normalize_rows_f32(n)

    # F.pairwise_distance: ||x1 - x2 + eps||_2 along the last dim.
    # pos_dist is reduced before neg_diff is built -> shorter (TB, D) live ranges.
    pos_diff = a - p + _PAIRWISE_EPS
    pos_dist = jnp.sqrt(jnp.sum(pos_diff * pos_diff, axis=-1, keepdims=True))
    neg_diff = a - n + _PAIRWISE_EPS
    neg_dist = jnp.sqrt(jnp.sum(neg_diff * neg_diff, axis=-1, keepdims=True))
    loss = jnp.maximum(pos_dist - neg_dist + margin, 0.0)     # (TB, 1)

    # Mask rows of a ragged final tile (compile-time branch). jnp.where (not a
    # mask multiply) so padded NaN/Inf rows never pollute the partial sum.
    if batch % block_b != 0:
        rows = jax.lax.broadcasted_iota(jnp.int32, loss.shape, 0) + i * block_b
        loss = jnp.where(rows < batch, loss, 0.0)

    # Per-tile partial sum -> tiny SMEM output, one scalar per grid step.
    o_ref[0, 0] = jnp.sum(loss)


def triplet_loss(anchor, positive, negative, margin: float = 0.5,
                 block_b=None, normalize_inputs: bool = False):
    """Pallas TPU FaceNet TripletLoss forward. Returns a scalar."""
    assert anchor.shape == positive.shape == negative.shape
    assert anchor.dtype == positive.dtype == negative.dtype
    _check_inputs(anchor)
    b, d = anchor.shape

    budget, vmem_limit = _vmem_budgets()
    itemsize = jnp.dtype(anchor.dtype).itemsize
    align = 16 if itemsize == 2 else 8
    tb = _pick_block_b(b, d, n_streams=3, itemsize=itemsize,
                       block_b=block_b, budget_bytes=budget, align=align)
    grid_b = pl.cdiv(b, tb)

    kernel = functools.partial(
        _triplet_partial_kernel, margin=float(margin), batch=b, block_b=tb,
        normalize_inputs=bool(normalize_inputs))

    in_spec = pl.BlockSpec((tb, d), lambda i: (i, 0))
    partials = pl.pallas_call(
        kernel,
        out_shape=jax.ShapeDtypeStruct((grid_b, 1), jnp.float32),
        grid=(grid_b,),
        in_specs=[in_spec, in_spec, in_spec],
        # One scalar partial sum per tile; no cross-step state -> the batch
        # axis is parallel and can shard across TensorCores on v7x.
        out_specs=pl.BlockSpec((1, 1), lambda i: (i, 0),
                               memory_space=pltpu.MemorySpace.SMEM),
        compiler_params=pltpu.CompilerParams(
            dimension_semantics=("parallel",),
            vmem_limit_bytes=vmem_limit,
        ),
    )(anchor, positive, negative)

    # Tiny (num_tiles,) final reduction + mean done outside the kernel; divide
    # by the true batch size (padded rows were masked to zero in-kernel).
    return jnp.sum(partials) / b


def facenet_triplet_loss(anchor, positive, negative, margin: float = 0.5,
                         block_b=None):
    """Fused forward tail + loss: triplet loss on L2-normalized embeddings,
    without writing the normalized embeddings back to HBM."""
    return triplet_loss(anchor, positive, negative, margin=margin,
                        block_b=block_b, normalize_inputs=True)


# ---------------------------------------------------------------------------
# Pure-JAX references (mirror the PyTorch semantics)
# ---------------------------------------------------------------------------
def _reference_l2_normalize(x):
    norm = jnp.sqrt(jnp.sum(x * x, axis=-1, keepdims=True))
    return x / jnp.maximum(norm, _NORMALIZE_EPS)


def _reference_triplet_loss(anchor, positive, negative, margin: float = 0.5):
    pos = jnp.sqrt(jnp.sum((anchor - positive + _PAIRWISE_EPS) ** 2, axis=-1))
    neg = jnp.sqrt(jnp.sum((anchor - negative + _PAIRWISE_EPS) ** 2, axis=-1))
    return jnp.mean(jnp.maximum(pos - neg + margin, 0.0))


if __name__ == "__main__":
    key = jax.random.PRNGKey(0)
    k_a, k_p, k_n = jax.random.split(key, 3)

    # FaceNet embedding size is 512; B=20 is deliberately not a multiple of the
    # demo tile so the masked ragged-tile path is exercised.
    B, D = 20, 512
    anchor = jax.random.normal(k_a, (B, D), dtype=jnp.float32)
    positive = jax.random.normal(k_p, (B, D), dtype=jnp.float32)
    negative = jax.random.normal(k_n, (B, D), dtype=jnp.float32)

    # 1) forward tail: F.normalize(embeddings, p=2, dim=1)
    emb = jax.block_until_ready(facenet_forward(anchor, block_b=8))
    ref_emb = _reference_l2_normalize(anchor)
    assert jnp.allclose(emb, ref_emb, rtol=1e-5, atol=1e-5)

    # 2) triplet loss: multi-tile grid, ragged last tile, per-tile partial sums
    loss = jax.block_until_ready(
        triplet_loss(anchor, positive, negative, margin=0.5, block_b=8))
    ref_loss = _reference_triplet_loss(anchor, positive, negative, margin=0.5)
    assert jnp.allclose(loss, ref_loss, rtol=1e-5, atol=1e-5), (loss, ref_loss)

    # 3) fused normalize + triplet loss (no HBM round trip for normalized rows)
    floss = jax.block_until_ready(
        facenet_triplet_loss(anchor, positive, negative, margin=0.5, block_b=8))
    ref_floss = _reference_triplet_loss(
        _reference_l2_normalize(anchor), _reference_l2_normalize(positive),
        _reference_l2_normalize(negative), margin=0.5)
    assert jnp.allclose(floss, ref_floss, rtol=1e-5, atol=1e-5), (floss, ref_floss)

    # 4) bf16 I/O path of the normalize kernel (byte-reduction lever for v5e)
    x_bf16 = anchor[:16].astype(jnp.bfloat16)
    emb_bf16 = jax.block_until_ready(l2_normalize(x_bf16, block_b=16))
    ref_bf16 = _reference_l2_normalize(x_bf16.astype(jnp.float32))
    assert jnp.allclose(emb_bf16.astype(jnp.float32), ref_bf16,
                        rtol=2e-2, atol=2e-2)

    print("KERNEL_OK")
</pallas_src>

<mosaic_0001>
module attributes {stable_mosaic.version = 11 : i64} {
  func.func @_l2_normalize_kernel(%arg0: i32, %arg1: memref<8x512xf32, #tpu.memory_space<vmem>>, %arg2: memref<8x512xf32, #tpu.memory_space<vmem>>) attributes {dimension_semantics = [#tpu.dimension_semantics<parallel>], iteration_bounds = array<i64: 3>, scalar_prefetch = 0 : i64, scratch_operands = 0 : i64, tpu.core_type = #tpu.core_type<tc>, window_params = [{transform_indices = @transform_0, window_bounds = array<i64: 8, 512>}, {transform_indices = @transform_1, window_bounds = array<i64: 8, 512>}]} {
    %c0 = arith.constant 0 : index
    %c0_0 = arith.constant 0 : index
    %0 = vector.load %arg1[%c0, %c0_0] : memref<8x512xf32, #tpu.memory_space<vmem>>, vector<8x512xf32>
    %1 = arith.mulf %0, %0 : vector<8x512xf32>
    %cst = arith.constant dense<0.000000e+00> : vector<8xf32>
    %2 = vector.multi_reduction <add>, %1, %cst [1] : vector<8x512xf32> to vector<8xf32>
    %3 = vector.shape_cast %2 : vector<8xf32> to vector<8x1xf32>
    %4 = math.sqrt %3 : vector<8x1xf32>
    %cst_1 = arith.constant 9.99999996E-13 : f32
    %5 = vector.broadcast %cst_1 : f32 to vector<8x1xf32>
    %6 = arith.maximumf %4, %5 : vector<8x1xf32>
    %7 = tpu.reciprocal %6 : vector<8x1xf32> -> vector<8x1xf32>
    %8 = vector.broadcast %7 : vector<8x1xf32> to vector<8x512xf32>
    %9 = arith.mulf %0, %8 : vector<8x512xf32>
    %c0_2 = arith.constant 0 : index
    %c0_3 = arith.constant 0 : index
    %10 = vector.load %arg2[%c0_2, %c0_3] : memref<8x512xf32, #tpu.memory_space<vmem>>, vector<8x512xf32>
    tpu.vector_store %arg2[%c0_2, %c0_3], %9 {strides = array<i32>} : memref<8x512xf32, #tpu.memory_space<vmem>>, vector<8x512xf32>,
    return
  }
  func.func @transform_0(%arg0: i32) -> (i32, i32) {
    %c0_i32 = arith.constant 0 : i32
    %c0_i32_0 = arith.constant 0 : i32
    return %arg0, %c0_i32 : i32, i32
  }
  func.func @transform_1(%arg0: i32) -> (i32, i32) {
    %c0_i32 = arith.constant 0 : i32
    %c0_i32_0 = arith.constant 0 : i32
    return %arg0, %c0_i32 : i32, i32
  }
}

</mosaic_0001>

<bundles_post_ra>
// kernel: tpu_custom_call.1
= control target key start
LH: loop header
LB: loop body
LE: loop exit
PB: predicated region body
PF: predicated region fallthrough
CT: control target
= control target key end

     0   :  { %6 = vsyncpa [#allocation3], 0  ;;  %s571_s0 = inlined_call_operand.hbm [shape: f32[20,512], index: 0, kind: input, shape index: {}]   ;;  %s572_s1 = inlined_call_operand.hbm [shape: f32[20,512], index: 1, kind: output, shape index: {}]  }
   0x1   :  { %8 = vsyncpa [#allocation3 + $0x1], 0 }
   0x2   :  { %9 = vsyncpa [#allocation4], 0 }
   0x3   :  { %11 = vsyncpa [#allocation4 + $0x1], 0  ;;  %s420_s6 = smov 0   ;;  %s422_s7 = smov 0  }
   0x4   :  { %s424_s8 = smov 0   ;;  %s426_s9 = smov 0  }
   0x5 LB: > { %s441_s10 = sadd.s32 4294967295, %s406_s9   ;;  %s248_s11 = sadd.s32 4294967294, %s406_s9   ;;  %s406_s9 = sphi %s426_s9, %s588_s9   ;;  %s402_s8 = sphi %s424_s8, %s587_s8   ;;  %s398_s7 = sphi %s422_s7, %s586_s7   ;;  %s394_s6 = sphi %s420_s6, %s585_s6  }
   0x6   : > { %s445_s12 = sadd.s32 1, %s406_s9   ;;  %s24_s13 = sadd.s32 1, %s402_s8 }
   0x7   : > { %s21_s14 = ssub.s32 %s406_s9, %s445_s12  ;;  %p31_p0 = scmp.ne.s32.totalorder %s402_s8, %s398_s7 }
   0x8   : > { %p22_p1 = scmp.eq.s32.totalorder %s21_s14, 0  ;;  %p32_p2 = scmp.eq.s32.totalorder %s406_s9, 0 }
   0x9   : > { %p37_p3 = scmp.ne.s32.totalorder %s398_s7, %s394_s6  ;;  %p38_p4 = scmp.eq.s32.totalorder %s441_s10, 0 }
   0xa   : > { %s457_s15 = scalar_select %p22_p1, %s402_s8, %s24_s13  }
   0xb   : > { %p459_p5 = por %p32_p2, %p31_p0  ;;  %p463_p6 = por %p38_p4, %p37_p3 }
   0xc   : > { %p61_p7 = scmp.eq.s32.totalorder %s441_s10, 2  ;;  %p67_p8 = scmp.eq.s32.totalorder %s248_s11, 2 }
   0xd   : > { %s576_s17 = scalar_select %p463_p6, 1, 0 }
   0xe   : > { %p276_p9 = scmp.lt.s32.totalorder %s406_s9, 3  ;;  %p469_p10 = por %p61_p7, %p31_p0 }
   0xf   : > { %p473_p11 = por %p67_p8, %p37_p3  ;;  %s87_s20 = sand.u32 1, %s402_s8  }
  0x10   : > { %s577_s18 = scalar_select %p469_p10, 1, 0 }
  0x11   : > { %s578_s19 = scalar_select %p473_p11, 1, 0 }
  0x12   : > { %s262_s21 = sshll.u32 %s406_s9, 9  ;;  %s251_s22 = sshll.u32 %s87_s20, 5 }
  0x13   : > { %s482_s25 = scalar_lea.hbm %s571_s0, %s262_s21  ;;  %s91_s26 = scalar_lea.vmem [#allocation2], %s251_s22 }
  0x14   : > { %s99_s27 = sshll.u32 %s91_s26, 4  ;;  %p486_p12 = pnand %p276_p9, %p459_p5  ;;  %s490_s27 = int_to_ptr.vmem [resolvable:$true] %s99_s27 }
  0x15   : > { %s88_s29 = scalar_lea.sflag [#allocation3], %s87_s20  ;;  %s314_s30 = scalar_lea.hbm %s482_s25, 512 }
  0x16   : > { %p315_p1 = scmp.ne.s32.totalorder %s482_s25, %s314_s30  ;;  %p316_p2 = pneg %p486_p12 }
  0x17   : > { %s319_s4 = scalar_lea.hbm %s571_s0, 1536  ;;  %p320_p5 = scmp.lt.s32.totalorder %s482_s25, %s571_s0 }
  0x18   : > { %p317_p3 = pnand %p316_p2, %p315_p1  ;;  %p321_p7 = scmp.lt.s32.totalorder %s319_s4, %s314_s30 }
  0x1a   : > { %p318_p4 = pneg %p317_p3  ;;  %p322_p8 = por %p321_p7, %p320_p5 }
  0x1c   : > { %p323_p9 = pnand %p322_p8, %p318_p4 }
  0x1e   : > { %326 = shalt.err (!%p323_p9)
}
  0x1f   : > { %s327_s13 = scalar_lea.vmem %s490_s27, 512  ;;  %s408_s14 = smov [#allocation2]  }
  0x20   : > { %p328_p13 = scmp.ne.s32.totalorder %s490_s27, %s327_s13  ;;  %s332_s16 = sshll.u32 %s408_s14, 4  ;;  %s333_s16 = int_to_ptr.vmem [resolvable:$false] %s332_s16 }
  0x21   : > { %s334_s20 = scalar_lea.vmem %s333_s16, 1024  ;;  %p335_p3 = scmp.lt.s32.totalorder %s490_s27, %s333_s16 }
  0x22   : > { %p330_p0 = pnand %p328_p13, %p316_p2  ;;  %p336_p11 = scmp.lt.s32.totalorder %s334_s20, %s327_s13 }
  0x24   : > { %p331_p1 = pneg %p330_p0  ;;  %p337_p10 = por %p336_p11, %p335_p3 }
  0x26   : > { %p338_p6 = pnand %p337_p10, %p331_p1 }
  0x28   : > { %341 = shalt.err (!%p338_p6)
}
  0x29   : > { %271 = dma.hbm_to_vmem [thread:$0]  (!%p486_p12), %s482_s25, 512, %s490_s27, %s88_s29  }
  0x2a   : > { %p580_p4 = scmp.lt.s32.totalorder %s406_s9, 4  ;;  %p581_p5 = scmp.ge.s32.totalorder %s406_s9, 1 }
  0x2c   : > { %p105_p13 = pnand %p581_p5, %p580_p4 }
  0x2d   : > { %s517_s21 = sand.u32 (!%p105_p13), 1, %s398_s7   ;;  %p582_p6 = scmp.ne.s32.totalorder (!%p105_p13), %s576_s17, 0 }
  0x2e   : > { %108 = sbr.rel (%p105_p13) target bundleno = 249 (0xf9), region = 24  ;;  %s255_s22 = sshll.u32 (!%p105_p13), %s517_s21, 5 }
  0x2f   : > { %s111_s23 = scalar_lea.sflag (!%p105_p13), [#allocation3], %s517_s21  ;;  %s114_s24 = scalar_lea.vmem (!%p105_p13), [#allocation2], %s255_s22 }
  0x33   : > { %385 = dma.done.wait (%p582_p6), %s111_s23, 512  }
  0x34   : > { %387 = vsyncadd (%p582_p6), %s111_s23, 4294966784  ;;  %v133_v0 = vld [vmem:[%s114_s24] sm:$0xff]  ;;  %v134_v1 = vld [vmem:[%s114_s24 + $0x8] sm:$0xff]  ;;  %s263_s17 = sshll.u32 %s441_s10, 9  ;;  %s132_s25 = scalar_lea.vmem [#allocation5], %s255_s22 }
  0x35   : > { %v135_v2 = vld [vmem:[%s114_s24 + $0x10] sm:$0xff]  ;;  %v136_v3 = vld [vmem:[%s114_s24 + $0x18] sm:$0xff]  ;;  %v137_v4 = vmul.f32 %v133_v0, %v133_v0  ;;  %v138_v5 = vmul.f32 %v134_v1, %v134_v1  ;;  %s178_s26 = sshll.u32 %s132_s25, 4  ;;  %s529_s29 = scalar_lea.hbm %s572_s1, %s263_s17  ;;  %s531_s26 = int_to_ptr.vmem [resolvable:$true] %s178_s26 }
  0x36   : > { %v139_v6 = vmul.f32 %v135_v2, %v135_v2  ;;  %v140_v7 = vmul.f32 %v136_v3, %v136_v3  ;;  %s164_s10 = scalar_lea.sflag [#allocation4], %s517_s21  ;;  %s342_s30 = scalar_lea.vmem %s531_s26, 512 }
  0x37   : > { %v141_v8 = vadd.f32 %v138_v5, %v137_v4  ;;  %p343_p10 = scmp.ne.s32.totalorder %s531_s26, %s342_s30  ;;  %p583_p11 = scmp.ne.s32.totalorder %s577_s18, 0 }
  0x38   : > { %s409_s2 = smov [#allocation5]  }
  0x39   : > { %v142_v9 = vadd.f32 %v141_v8, %v139_v6  ;;  %p344_p12 = pnand %p343_p10, %p583_p11  ;;  %s346_s3 = sshll.u32 %s409_s2, 4  ;;  %s347_s3 = int_to_ptr.vmem [resolvable:$false] %s346_s3 }
  0x3a   : > { %s348_s4 = scalar_lea.vmem %s347_s3, 1024  ;;  %p349_p2 = scmp.lt.s32.totalorder %s531_s26, %s347_s3 }
  0x3b   : > { %v143_v10 = vadd.f32 %v142_v9, %v140_v7  ;;  %p345_p0 = pneg %p344_p12  ;;  %p350_p7 = scmp.lt.s32.totalorder %s348_s4, %s342_s30 }
  0x3d   : > { %144 = vadd.xlane.f32.xlu0 %v143_v10  ;;  %p351_p8 = por %p350_p7, %p349_p2 }
  0x3f   : > { %p352_p9 = pnand %p351_p8, %p345_p0 }
  0xc6   : > { %v145_v11 = vpop.xlane.xlu0 %144 }
  0xc7   : > { %310 = vrsqrt.f32 %v145_v11  ;;  %vm148_vm0 = vcmp.eq.f32.partialorder %v145_v11, inf  ;;  %v151_v14 = vand.u32 2147483648, %v145_v11  ;;  %vm150_vm1 = vcmp.eq.f32.partialorder %v145_v11, 0.0 }
  0xd4   : > { %v311_v12 = vpop.eup %310 }
  0xd5   : > { %v147_v13 = vmul.f32 %v311_v12, %v145_v11 }
  0xd7   : > { %v149_v15 = vsel %vm148_vm0, %v145_v11, %v147_v13 }
  0xd8   : > { %v152_v16 = vsel %vm150_vm1, %v151_v14, %v149_v15 }
  0xd9   : > { %v153_v17 = vmax.f32 %v152_v16, 1e-12 }
  0xdb   : > { %312 = vrcp.f32 %v153_v17 }
  0xe8   : > { %v313_v18 = vpop.eup %312 }
  0xe9   : > { %v155_v19 = vmul.f32 %v313_v18, %v133_v0  ;;  %v156_v20 = vmul.f32 %v313_v18, %v134_v1  ;;  %v157_v21 = vmul.f32 %v313_v18, %v135_v2  ;;  %v158_v22 = vmul.f32 %v313_v18, %v136_v3 }
  0xeb   : > { %159 = vst [vmem:[%s132_s25] sm:$0xff] %v155_v19  ;;  %160 = vst [vmem:[%s132_s25 + $0x8] sm:$0xff] %v156_v20 }
  0xec   : > { %161 = vst [vmem:[%s132_s25 + $0x10] sm:$0xff] %v157_v21  ;;  %162 = vst [vmem:[%s132_s25 + $0x18] sm:$0xff] %v158_v22 }
  0xed   : > { %355 = shalt.err (!%p352_p9)
}
  0xee   : > { %s356_s5 = scalar_lea.hbm %s529_s29, 512  ;;  %s360_s14 = scalar_lea.hbm %s572_s1, 1536 }
  0xef   : > { %p357_p1 = scmp.ne.s32.totalorder %s529_s29, %s356_s5  ;;  %p361_p5 = scmp.lt.s32.totalorder %s529_s29, %s572_s1 }
  0xf0   : > { %p362_p13 = scmp.lt.s32.totalorder %s360_s14, %s356_s5 }
  0xf1   : > { %p358_p3 = pnand %p357_p1, %p583_p11 }
  0xf2   : > { %p363_p6 = por %p362_p13, %p361_p5 }
  0xf3   : > { %p359_p4 = pneg %p358_p3 }
  0xf5   : > { %p364_p10 = pnand %p363_p6, %p359_p4 }
  0xf7   : > { %367 = shalt.err (!%p364_p10)
}
  0xf8   : > { %266 = dma.vmem_to_hbm [thread:$0]  (%p583_p11), %s531_s26, 512, %s529_s29, %s164_s10  }
  0xf9 PF: > { %p277_p12 = scmp.ge.s32.totalorder %s406_s9, 2  ;;  %s190_s21 = sand.u32 1, %s394_s6  }
  0xfa   : > { %p584_p0 = scmp.ne.s32.totalorder %s578_s19, 0  ;;  %s191_s22 = scalar_lea.sflag [#allocation4], %s190_s21 }
  0xfc   : > { %p273_p2 = pnand %p277_p12, %p584_p0 }
  0xfe   : > { %p274_p7 = pneg %p273_p2 }
 0x100   : > { %389 = dma.done.wait (%p274_p7), %s191_s22, 512  }
 0x101   : > { %391 = vsyncadd (%p274_p7), %s191_s22, 4294966784  ;;  %p14_p8 = scmp.ge.s32.totalorder %s445_s12, 5   ;;  %s585_s6 = smov %s398_s7 }
 0x102   : > { %s586_s7 = smov %s402_s8  ;;  %s587_s8 = smov %s457_s15 }
 0x103   : > { %s588_s9 = smov %s445_s12  ;;  %16 = sbr.rel (!%p14_p8) target bundleno = 5 (0x5), region = 69 }
 0x108   :  { %196 = vsyncpa [#allocation3], 1 }
 0x109   :  { %198 = vsyncpa [#allocation3 + $0x1], 1 }
 0x10a   :  { %199 = vsyncpa [#allocation4], 1 }
 0x10b   :  { %201 = vsyncpa [#allocation4 + $0x1], 1 }

</bundles_post_ra>
